<compile_context>
chip_gen: v5e
topology: v5e:2x2
jax: 0.10.0
libtpu: 0.0.40
codegen_flags: <defaults>
</compile_context>

<pallas_src>
import functools

import jax
import jax.numpy as jnp
from jax.experimental import pallas as pl
from jax.experimental.pallas import tpu as pltpu

_VMEM_LIMIT = 48 * 1024 * 1024      # below v7x 64 MiB physical, above default scoped
_BAND_PIX_CAP = 8192                # matmul rows (flat pixels) per conv band
_FC_K_TILE_CAP = 2048
_FC_M_TILE_CAP = 1024


# ---------------------------------------------------------------------------
# static tiling helpers
# ---------------------------------------------------------------------------
def _band_rows(h, wp, cap):
    """Largest divisor tb of h with tb * wp <= cap (tb output rows per band)."""
    best = 1
    for tb in range(1, h + 1):
        if h % tb == 0 and tb * wp <= cap:
            best = tb
    return best


def _pool_tile(m, cap=32):
    for d in range(min(m, cap), 0, -1):
        if m % d == 0:
            return d
    return 1


def _fc_tile(dim, cap):
    """Largest divisor of dim that is a multiple of 128 and <= cap, else dim."""
    for d in range(cap, 127, -1):
        if dim % d == 0 and d % 128 == 0:
            return d
    return dim


# ---------------------------------------------------------------------------
# conv3x3 (pad=1) + folded eval-BN + ReLU on one flattened halo band
#   x_ref : (1, Lb, Cin)   flattened padded band, row stride = wp = W + 2
#   w_ref : (9, Cin, Cout) taps ordered ky*3 + kx
#   o_ref : (1, To, Cout)  flattened output band (2 junk columns per row kept)
# All 9 taps are static-offset slices of the VMEM-resident band; full contraction
# happens inside one grid step (no scratch accumulator, no k-grid axis).
# ---------------------------------------------------------------------------
def _conv_kernel(wp, to, x_ref, w_ref, sc_ref, sh_ref, o_ref):
    acc = None
    for ky in range(3):
        for kx in range(3):
            lhs = x_ref[0, pl.ds(ky * wp + kx, to), :]            # (To, Cin) bf16
            part = jnp.dot(lhs, w_ref[ky * 3 + kx],
                           preferred_element_type=jnp.float32)    # f32 accum
            acc = part if acc is None else acc + part
    y = acc * sc_ref[...] + sh_ref[...]
    y = jnp.maximum(y, 0.0)
    o_ref[0] = y.astype(o_ref.dtype)


def conv3x3_bn_relu(x, w9, scale, shift, band_cap=_BAND_PIX_CAP):
    """x: (N, H, W, Cin) bf16 -> (N, H, W+2, Cout) bf16 (last 2 cols are junk)."""
    n, h, w, cin = x.shape
    cout = w9.shape[2]
    wp = w + 2
    tb = _band_rows(h, wp, band_cap)
    nb = h // tb
    lb = (tb + 3) * wp          # tb+2 halo rows + 1 extra padded row (tap overrun)
    to = tb * wp

    # one zero-pad copy; overlapping row bands (2-3 extra rows per band)
    xp = jnp.pad(x, ((0, 0), (1, 2), (1, 1), (0, 0)))             # (N, H+3, Wp, Cin)
    bands = [xp[:, b * tb: b * tb + tb + 3] for b in range(nb)]
    xb = jnp.stack(bands, axis=1).reshape(n * nb, lb, cin)

    out = pl.pallas_call(
        functools.partial(_conv_kernel, wp, to),
        out_shape=jax.ShapeDtypeStruct((n * nb, to, cout), jnp.bfloat16),
        grid=(n * nb,),
        in_specs=[
            pl.BlockSpec((1, lb, cin), lambda i: (i, 0, 0)),
            pl.BlockSpec((9, cin, cout), lambda i: (0, 0, 0)),    # resident weights
            pl.BlockSpec((1, cout), lambda i: (0, 0)),
            pl.BlockSpec((1, cout), lambda i: (0, 0)),
        ],
        out_specs=pl.BlockSpec((1, to, cout), lambda i: (i, 0, 0)),
        compiler_params=pltpu.CompilerParams(
            dimension_semantics=("parallel",),
            vmem_limit_bytes=_VMEM_LIMIT),
    )(xb, w9, scale, shift)
    # (N*nb, tb*Wp, Cout) -> (N, H, Wp, Cout); columns [W, W+1] are junk
    return out.reshape(n, h, wp, cout)


# ---------------------------------------------------------------------------
# maxpool 2x2 stride 2, reading the "wide" conv output through free reshapes only
#   x_ref : (tp, 2, Wh, 2C)  row pair on axis 1, column pair packed into the lanes
#   o_ref : (tp, W/2, C)
# ---------------------------------------------------------------------------
def _pool_kernel(c, x_ref, o_ref):
    x = x_ref[...]
    m = jnp.maximum(x[:, 0], x[:, 1])               # max over the H pair
    m = jnp.maximum(m[:, :, :c], m[:, :, c:])       # max over the W pair (lane split)
    o_ref[...] = m[:, : o_ref.shape[1], :]          # drop the junk-column pair


def maxpool2x2(y_wide):
    """y_wide: (N, H, W+2, C) bf16 (2 junk cols) -> (N, H/2, W/2, C) bf16."""
    n, h, wp, c = y_wide.shape
    w = wp - 2
    wh = wp // 2
    m2 = n * h // 2
    xpool = y_wide.reshape(m2, 2, wh, 2 * c)        # contiguous reshape: no copy
    tp = _pool_tile(m2)
    out = pl.pallas_call(
        functools.partial(_pool_kernel, c),
        out_shape=jax.ShapeDtypeStruct((m2, w // 2, c), jnp.bfloat16),
        grid=(m2 // tp,),
        in_specs=[pl.BlockSpec((tp, 2, wh, 2 * c), lambda i: (i, 0, 0, 0))],
        out_specs=pl.BlockSpec((tp, w // 2, c), lambda i: (i, 0, 0)),
        compiler_params=pltpu.CompilerParams(
            dimension_semantics=("parallel",),
            vmem_limit_bytes=_VMEM_LIMIT),
    )(xpool)
    return out.reshape(n, h // 2, w // 2, c)


# ---------------------------------------------------------------------------
# Linear + folded eval-BN + optional ReLU
#   accumulate directly into the VMEM-resident f32 output block over the K grid
# ---------------------------------------------------------------------------
def _fc_kernel(relu, x_ref, w_ref, sc_ref, sh_ref, o_ref):
    k = pl.program_id(1)

    @pl.when(k == 0)
    def _():
        o_ref[...] = jnp.zeros_like(o_ref)

    o_ref[...] += jnp.dot(x_ref[...], w_ref[...],
                          preferred_element_type=jnp.float32)

    @pl.when(k == pl.num_programs(1) - 1)
    def _():
        y = o_ref[...] * sc_ref[...] + sh_ref[...]
        if relu:
            y = jnp.maximum(y, 0.0)
        o_ref[...] = y


def fc_layer(x, w_km, scale, shift, relu):
    """x: (N, K) bf16, w_km: (K, M) bf16 (pre-packed) -> (N, M) f32."""
    n, k = x.shape
    m = w_km.shape[1]
    tk = _fc_tile(k, _FC_K_TILE_CAP)
    tm = _fc_tile(m, _FC_M_TILE_CAP)
    return pl.pallas_call(
        functools.partial(_fc_kernel, relu),
        out_shape=jax.ShapeDtypeStruct((n, m), jnp.float32),
        grid=(m // tm, k // tk),
        in_specs=[
            pl.BlockSpec((n, tk), lambda j, kk: (0, kk)),
            pl.BlockSpec((tk, tm), lambda j, kk: (kk, j)),
            pl.BlockSpec((1, tm), lambda j, kk: (0, j)),
            pl.BlockSpec((1, tm), lambda j, kk: (0, j)),
        ],
        out_specs=pl.BlockSpec((n, tm), lambda j, kk: (0, j)),
        compiler_params=pltpu.CompilerParams(
            dimension_semantics=("parallel", "arbitrary"),
            vmem_limit_bytes=_VMEM_LIMIT),
    )(x, w_km, scale, shift)


# ---------------------------------------------------------------------------
# parameters (deterministic; pre-packed bf16 weights + f32 folded-BN affine)
# ---------------------------------------------------------------------------
CONV_CFG = [
    [(3, 64), (64, 64)],
    [(64, 128), (128, 128)],
    [(128, 256), (256, 256), (256, 256)],
    [(256, 512), (512, 512), (512, 512)],
    [(512, 512), (512, 512), (512, 512)],
]
FC_RELU = (True, True, False)   # layer6/7: BN + ReLU; layer8: plain Linear


def init_params(key, num_classes=1000, eps=1e-5):
    params = {"conv_blocks": [], "fc": []}
    for block in CONV_CFG:
        blk = []
        for cin, cout in block:
            key, kw = jax.random.split(key)
            std = (2.0 / (cout * 9)) ** 0.5                 # kaiming_normal_, fan_out
            w = jax.random.normal(kw, (cout, cin, 3, 3), jnp.float32) * std
            bias = jnp.zeros((cout,), jnp.float32)
            # eval-mode BN fold (gamma=1, beta=0, mean=0, var=1 here; general formula)
            gamma = jnp.ones((cout,), jnp.float32)
            beta = jnp.zeros((cout,), jnp.float32)
            mean = jnp.zeros((cout,), jnp.float32)
            var = jnp.ones((cout,), jnp.float32)
            scale = gamma / jnp.sqrt(var + eps)
            shift = beta + (bias - mean) * scale
            w9 = jnp.transpose(w, (2, 3, 1, 0)).reshape(9, cin, cout).astype(jnp.bfloat16)
            blk.append((w9, scale.reshape(1, cout), shift.reshape(1, cout)))
        params["conv_blocks"].append(blk)

    fc_dims = [(7 * 7 * 512, 4096, True), (4096, 4096, True), (4096, num_classes, False)]
    for kin, kout, has_bn in fc_dims:
        key, kw = jax.random.split(key)
        # generated directly in packed (K, M) layout (same distribution as
        # transposing a PyTorch (M, K) random init); Linear bias = 0.
        w_km = (jax.random.normal(kw, (kin, kout), jnp.float32) * 0.01).astype(jnp.bfloat16)
        bias = jnp.zeros((kout,), jnp.float32)
        if has_bn:
            scale = jnp.full((kout,), 1.0 / float(jnp.sqrt(1.0 + eps)), jnp.float32)
            shift = bias * scale
        else:
            scale = jnp.ones((kout,), jnp.float32)
            shift = bias
        params["fc"].append((w_km, scale.reshape(1, kout), shift.reshape(1, kout)))
    return params


# ---------------------------------------------------------------------------
# forward
# ---------------------------------------------------------------------------
@jax.jit
def vgg16_bn_forward(params, x_nchw):
    x = jnp.transpose(x_nchw, (0, 2, 3, 1)).astype(jnp.bfloat16)       # NCHW -> NHWC
    for blk in params["conv_blocks"]:
        y_wide = None
        for w9, sc, sh in blk:
            y_wide = conv3x3_bn_relu(x, w9, sc, sh)
            x = y_wide[:, :, :-2, :]          # crop junk cols (fuses into next prep)
        x = maxpool2x2(y_wide)                # pool reads the wide buffer directly
    feats_nchw = jnp.transpose(x, (0, 3, 1, 2)).astype(jnp.float32)    # (N, 512, 7, 7)
    n = feats_nchw.shape[0]
    h = feats_nchw.reshape(n, -1).astype(jnp.bfloat16)   # PyTorch .view(N, -1) order
    for (w_km, sc, sh), relu in zip(params["fc"], FC_RELU):
        h = fc_layer(h, w_km, sc, sh, relu)
        if relu:
            h = h.astype(jnp.bfloat16)
    return feats_nchw, h


# ---------------------------------------------------------------------------
# small self-checks against pure-jnp references (loose tolerance for bf16)
# ---------------------------------------------------------------------------
def _reference_conv_bn_relu(x, w9, scale, shift):
    n, h, w, _ = x.shape
    xp = jnp.pad(x.astype(jnp.float32), ((0, 0), (1, 1), (1, 1), (0, 0)))
    acc = 0.0
    for ky in range(3):
        for kx in range(3):
            acc = acc + jnp.einsum("nhwc,co->nhwo",
                                   xp[:, ky:ky + h, kx:kx + w, :],
                                   w9[ky * 3 + kx].astype(jnp.float32))
    return jnp.maximum(acc * scale.reshape(1, 1, 1, -1) + shift.reshape(1, 1, 1, -1), 0.0)


def _reference_pool(y):
    n, h, w, c = y.shape
    return jnp.max(jnp.max(y.reshape(n, h // 2, 2, w // 2, 2, c), axis=4), axis=2)


def _self_check():
    key = jax.random.PRNGKey(42)
    k1, k2 = jax.random.split(key)
    x = jax.random.normal(k1, (1, 8, 8, 16), jnp.float32).astype(jnp.bfloat16)
    w9 = (jax.random.normal(k2, (9, 16, 64), jnp.float32) * 0.1).astype(jnp.bfloat16)
    sc = jnp.full((1, 64), 0.9, jnp.float32)
    sh = jnp.full((1, 64), 0.05, jnp.float32)
    y_wide = conv3x3_bn_relu(x, w9, sc, sh, band_cap=40)      # forces 2 halo bands
    y = y_wide[:, :, :-2, :].astype(jnp.float32)
    y_ref = _reference_conv_bn_relu(x, w9, sc, sh)
    assert bool(jnp.allclose(y, y_ref, rtol=0.1, atol=0.1)), "conv self-check failed"
    p = maxpool2x2(y_wide).astype(jnp.float32)
    assert bool(jnp.allclose(p, _reference_pool(y_ref), rtol=0.1, atol=0.1)), \
        "pool self-check failed"

    k3, k4 = jax.random.split(k1)
    xf = jax.random.normal(k3, (2, 256), jnp.float32).astype(jnp.bfloat16)
    wf = (jax.random.normal(k4, (256, 384), jnp.float32) * 0.05).astype(jnp.bfloat16)
    scf = jnp.full((1, 384), 1.1, jnp.float32)
    shf = jnp.full((1, 384), -0.02, jnp.float32)
    o = fc_layer(xf, wf, scf, shf, relu=True)
    o_ref = jnp.maximum(xf.astype(jnp.float32) @ wf.astype(jnp.float32) * scf + shf, 0.0)
    assert bool(jnp.allclose(o, o_ref, rtol=0.1, atol=0.1)), "fc self-check failed"


if __name__ == "__main__":
    _self_check()

    key = jax.random.PRNGKey(0)
    pkey, xkey = jax.random.split(key)
    params = init_params(pkey, num_classes=1000)
    # 224x224 input is implied by the Linear(7*7*512, 4096) after 5 pools.
    x = jax.random.normal(xkey, (2, 3, 224, 224), jnp.float32)
    feats, logits = vgg16_bn_forward(params, x)
    jax.block_until_ready((feats, logits))
    assert feats.shape == (2, 512, 7, 7)
    assert logits.shape == (2, 1000)
    assert bool(jnp.all(jnp.isfinite(logits)))
    print("KERNEL_OK")
</pallas_src>

<mosaic_0001>
module attributes {stable_mosaic.version = 11 : i64} {
  func.func @_conv_kernel(%arg0: i32, %arg1: memref<1x70x16xbf16, #tpu.memory_space<vmem>>, %arg2: memref<9x16x64xbf16, #tpu.memory_space<vmem>>, %arg3: memref<1x64xf32, #tpu.memory_space<vmem>>, %arg4: memref<1x64xf32, #tpu.memory_space<vmem>>, %arg5: memref<1x40x64xbf16, #tpu.memory_space<vmem>>) attributes {dimension_semantics = [#tpu.dimension_semantics<parallel>], iteration_bounds = array<i64: 2>, scalar_prefetch = 0 : i64, scratch_operands = 0 : i64, tpu.core_type = #tpu.core_type<tc>, window_params = [{transform_indices = @transform_0, window_bounds = array<i64: 1, 70, 16>}, {pipeline_mode = #tpu.pipeline_mode<synchronous>, transform_indices = @transform_1, window_bounds = array<i64: 9, 16, 64>}, {pipeline_mode = #tpu.pipeline_mode<synchronous>, transform_indices = @transform_2, window_bounds = array<i64: 1, 64>}, {pipeline_mode = #tpu.pipeline_mode<synchronous>, transform_indices = @transform_3, window_bounds = array<i64: 1, 64>}, {transform_indices = @transform_4, window_bounds = array<i64: 1, 40, 64>}]} {
    %c0 = arith.constant 0 : index
    %c0_0 = arith.constant 0 : index
    %c0_1 = arith.constant 0 : index
    %0 = vector.load %arg1[%c0, %c0_0, %c0_1] : memref<1x70x16xbf16, #tpu.memory_space<vmem>>, vector<1x40x16xbf16>
    %1 = vector.shape_cast %0 : vector<1x40x16xbf16> to vector<40x16xbf16>
    %c0_2 = arith.constant 0 : index
    %c0_3 = arith.constant 0 : index
    %c0_4 = arith.constant 0 : index
    %2 = vector.load %arg2[%c0_2, %c0_3, %c0_4] : memref<9x16x64xbf16, #tpu.memory_space<vmem>>, vector<1x16x64xbf16>
    %3 = vector.shape_cast %2 : vector<1x16x64xbf16> to vector<16x64xbf16>
    %cst = arith.constant dense<0.000000e+00> : vector<40x64xf32>
    %4 = tpu.matmul %1, %3, %cst {dimension_numbers = #tpu.dot_dimension_numbers<[1], [0], [0], [1], [0, 0, 1, 1], [], []>} : vector<40x16xbf16>, vector<16x64xbf16>, vector<40x64xf32> -> vector<40x64xf32>
    %c0_5 = arith.constant 0 : index
    %c1 = arith.constant 1 : index
    %c0_6 = arith.constant 0 : index
    %5 = vector.load %arg1[%c0_5, %c1, %c0_6] : memref<1x70x16xbf16, #tpu.memory_space<vmem>>, vector<1x40x16xbf16>
    %6 = vector.shape_cast %5 : vector<1x40x16xbf16> to vector<40x16xbf16>
    %c1_7 = arith.constant 1 : index
    %c0_8 = arith.constant 0 : index
    %c0_9 = arith.constant 0 : index
    %7 = vector.load %arg2[%c1_7, %c0_8, %c0_9] : memref<9x16x64xbf16, #tpu.memory_space<vmem>>, vector<1x16x64xbf16>
    %8 = vector.shape_cast %7 : vector<1x16x64xbf16> to vector<16x64xbf16>
    %cst_10 = arith.constant dense<0.000000e+00> : vector<40x64xf32>
    %9 = tpu.matmul %6, %8, %cst_10 {dimension_numbers = #tpu.dot_dimension_numbers<[1], [0], [0], [1], [0, 0, 1, 1], [], []>} : vector<40x16xbf16>, vector<16x64xbf16>, vector<40x64xf32> -> vector<40x64xf32>
    %10 = arith.addf %4, %9 : vector<40x64xf32>
    %c0_11 = arith.constant 0 : index
    %c2 = arith.constant 2 : index
    %c0_12 = arith.constant 0 : index
    %11 = vector.load %arg1[%c0_11, %c2, %c0_12] : memref<1x70x16xbf16, #tpu.memory_space<vmem>>, vector<1x40x16xbf16>
    %12 = vector.shape_cast %11 : vector<1x40x16xbf16> to vector<40x16xbf16>
    %c2_13 = arith.constant 2 : index
    %c0_14 = arith.constant 0 : index
    %c0_15 = arith.constant 0 : index
    %13 = vector.load %arg2[%c2_13, %c0_14, %c0_15] : memref<9x16x64xbf16, #tpu.memory_space<vmem>>, vector<1x16x64xbf16>
    %14 = vector.shape_cast %13 : vector<1x16x64xbf16> to vector<16x64xbf16>
    %cst_16 = arith.constant dense<0.000000e+00> : vector<40x64xf32>
    %15 = tpu.matmul %12, %14, %cst_16 {dimension_numbers = #tpu.dot_dimension_numbers<[1], [0], [0], [1], [0, 0, 1, 1], [], []>} : vector<40x16xbf16>, vector<16x64xbf16>, vector<40x64xf32> -> vector<40x64xf32>
    %16 = arith.addf %10, %15 : vector<40x64xf32>
    %c0_17 = arith.constant 0 : index
    %c10 = arith.constant 10 : index
    %c0_18 = arith.constant 0 : index
    %17 = vector.load %arg1[%c0_17, %c10, %c0_18] : memref<1x70x16xbf16, #tpu.memory_space<vmem>>, vector<1x40x16xbf16>
    %18 = vector.shape_cast %17 : vector<1x40x16xbf16> to vector<40x16xbf16>
    %c3 = arith.constant 3 : index
    %c0_19 = arith.constant 0 : index
    %c0_20 = arith.constant 0 : index
    %19 = vector.load %arg2[%c3, %c0_19, %c0_20] : memref<9x16x64xbf16, #tpu.memory_space<vmem>>, vector<1x16x64xbf16>
    %20 = vector.shape_cast %19 : vector<1x16x64xbf16> to vector<16x64xbf16>
    %cst_21 = arith.constant dense<0.000000e+00> : vector<40x64xf32>
    %21 = tpu.matmul %18, %20, %cst_21 {dimension_numbers = #tpu.dot_dimension_numbers<[1], [0], [0], [1], [0, 0, 1, 1], [], []>} : vector<40x16xbf16>, vector<16x64xbf16>, vector<40x64xf32> -> vector<40x64xf32>
    %22 = arith.addf %16, %21 : vector<40x64xf32>
    %c0_22 = arith.constant 0 : index
    %c11 = arith.constant 11 : index
    %c0_23 = arith.constant 0 : index
    %23 = vector.load %arg1[%c0_22, %c11, %c0_23] : memref<1x70x16xbf16, #tpu.memory_space<vmem>>, vector<1x40x16xbf16>
    %24 = vector.shape_cast %23 : vector<1x40x16xbf16> to vector<40x16xbf16>
    %c4 = arith.constant 4 : index
    %c0_24 = arith.constant 0 : index
    %c0_25 = arith.constant 0 : index
    %25 = vector.load %arg2[%c4, %c0_24, %c0_25] : memref<9x16x64xbf16, #tpu.memory_space<vmem>>, vector<1x16x64xbf16>
    %26 = vector.shape_cast %25 : vector<1x16x64xbf16> to vector<16x64xbf16>
    %cst_26 = arith.constant dense<0.000000e+00> : vector<40x64xf32>
    %27 = tpu.matmul %24, %26, %cst_26 {dimension_numbers = #tpu.dot_dimension_numbers<[1], [0], [0], [1], [0, 0, 1, 1], [], []>} : vector<40x16xbf16>, vector<16x64xbf16>, vector<40x64xf32> -> vector<40x64xf32>
    %28 = arith.addf %22, %27 : vector<40x64xf32>
    %c0_27 = arith.constant 0 : index
    %c12 = arith.constant 12 : index
    %c0_28 = arith.constant 0 : index
    %29 = vector.load %arg1[%c0_27, %c12, %c0_28] : memref<1x70x16xbf16, #tpu.memory_space<vmem>>, vector<1x40x16xbf16>
    %30 = vector.shape_cast %29 : vector<1x40x16xbf16> to vector<40x16xbf16>
    %c5 = arith.constant 5 : index
    %c0_29 = arith.constant 0 : index
    %c0_30 = arith.constant 0 : index
    %31 = vector.load %arg2[%c5, %c0_29, %c0_30] : memref<9x16x64xbf16, #tpu.memory_space<vmem>>, vector<1x16x64xbf16>
    %32 = vector.shape_cast %31 : vector<1x16x64xbf16> to vector<16x64xbf16>
    %cst_31 = arith.constant dense<0.000000e+00> : vector<40x64xf32>
    %33 = tpu.matmul %30, %32, %cst_31 {dimension_numbers = #tpu.dot_dimension_numbers<[1], [0], [0], [1], [0, 0, 1, 1], [], []>} : vector<40x16xbf16>, vector<16x64xbf16>, vector<40x64xf32> -> vector<40x64xf32>
    %34 = arith.addf %28, %33 : vector<40x64xf32>
    %c0_32 = arith.constant 0 : index
    %c20 = arith.constant 20 : index
    %c0_33 = arith.constant 0 : index
    %35 = vector.load %arg1[%c0_32, %c20, %c0_33] : memref<1x70x16xbf16, #tpu.memory_space<vmem>>, vector<1x40x16xbf16>
    %36 = vector.shape_cast %35 : vector<1x40x16xbf16> to vector<40x16xbf16>
    %c6 = arith.constant 6 : index
    %c0_34 = arith.constant 0 : index
    %c0_35 = arith.constant 0 : index
    %37 = vector.load %arg2[%c6, %c0_34, %c0_35] : memref<9x16x64xbf16, #tpu.memory_space<vmem>>, vector<1x16x64xbf16>
    %38 = vector.shape_cast %37 : vector<1x16x64xbf16> to vector<16x64xbf16>
    %cst_36 = arith.constant dense<0.000000e+00> : vector<40x64xf32>
    %39 = tpu.matmul %36, %38, %cst_36 {dimension_numbers = #tpu.dot_dimension_numbers<[1], [0], [0], [1], [0, 0, 1, 1], [], []>} : vector<40x16xbf16>, vector<16x64xbf16>, vector<40x64xf32> -> vector<40x64xf32>
    %40 = arith.addf %34, %39 : vector<40x64xf32>
    %c0_37 = arith.constant 0 : index
    %c21 = arith.constant 21 : index
    %c0_38 = arith.constant 0 : index
    %41 = vector.load %arg1[%c0_37, %c21, %c0_38] : memref<1x70x16xbf16, #tpu.memory_space<vmem>>, vector<1x40x16xbf16>
    %42 = vector.shape_cast %41 : vector<1x40x16xbf16> to vector<40x16xbf16>
    %c7 = arith.constant 7 : index
    %c0_39 = arith.constant 0 : index
    %c0_40 = arith.constant 0 : index
    %43 = vector.load %arg2[%c7, %c0_39, %c0_40] : memref<9x16x64xbf16, #tpu.memory_space<vmem>>, vector<1x16x64xbf16>
    %44 = vector.shape_cast %43 : vector<1x16x64xbf16> to vector<16x64xbf16>
    %cst_41 = arith.constant dense<0.000000e+00> : vector<40x64xf32>
    %45 = tpu.matmul %42, %44, %cst_41 {dimension_numbers = #tpu.dot_dimension_numbers<[1], [0], [0], [1], [0, 0, 1, 1], [], []>} : vector<40x16xbf16>, vector<16x64xbf16>, vector<40x64xf32> -> vector<40x64xf32>
    %46 = arith.addf %40, %45 : vector<40x64xf32>
    %c0_42 = arith.constant 0 : index
    %c22 = arith.constant 22 : index
    %c0_43 = arith.constant 0 : index
    %47 = vector.load %arg1[%c0_42, %c22, %c0_43] : memref<1x70x16xbf16, #tpu.memory_space<vmem>>, vector<1x40x16xbf16>
    %48 = vector.shape_cast %47 : vector<1x40x16xbf16> to vector<40x16xbf16>
    %c8 = arith.constant 8 : index
    %c0_44 = arith.constant 0 : index
    %c0_45 = arith.constant 0 : index
    %49 = vector.load %arg2[%c8, %c0_44, %c0_45] : memref<9x16x64xbf16, #tpu.memory_space<vmem>>, vector<1x16x64xbf16>
    %50 = vector.shape_cast %49 : vector<1x16x64xbf16> to vector<16x64xbf16>
    %cst_46 = arith.constant dense<0.000000e+00> : vector<40x64xf32>
    %51 = tpu.matmul %48, %50, %cst_46 {dimension_numbers = #tpu.dot_dimension_numbers<[1], [0], [0], [1], [0, 0, 1, 1], [], []>} : vector<40x16xbf16>, vector<16x64xbf16>, vector<40x64xf32> -> vector<40x64xf32>
    %52 = arith.addf %46, %51 : vector<40x64xf32>
    %c0_47 = arith.constant 0 : index
    %c0_48 = arith.constant 0 : index
    %53 = vector.load %arg3[%c0_47, %c0_48] : memref<1x64xf32, #tpu.memory_space<vmem>>, vector<1x64xf32>
    %54 = vector.broadcast %53 : vector<1x64xf32> to vector<40x64xf32>
    %55 = arith.mulf %52, %54 : vector<40x64xf32>
    %c0_49 = arith.constant 0 : index
    %c0_50 = arith.constant 0 : index
    %56 = vector.load %arg4[%c0_49, %c0_50] : memref<1x64xf32, #tpu.memory_space<vmem>>, vector<1x64xf32>
    %57 = vector.broadcast %56 : vector<1x64xf32> to vector<40x64xf32>
    %58 = arith.addf %55, %57 : vector<40x64xf32>
    %cst_51 = arith.constant 0.000000e+00 : f32
    %59 = vector.broadcast %cst_51 : f32 to vector<40x64xf32>
    %60 = arith.maximumf %58, %59 : vector<40x64xf32>
    %61 = arith.truncf %60 : vector<40x64xf32> to vector<40x64xbf16>
    %c0_52 = arith.constant 0 : index
    %c0_53 = arith.constant 0 : index
    %c0_54 = arith.constant 0 : index
    %62 = vector.load %arg5[%c0_52, %c0_53, %c0_54] : memref<1x40x64xbf16, #tpu.memory_space<vmem>>, vector<1x40x64xbf16>
    %63 = vector.shape_cast %62 : vector<1x40x64xbf16> to vector<40x64xbf16>
    %64 = vector.shape_cast %61 : vector<40x64xbf16> to vector<1x40x64xbf16>
    tpu.vector_store %arg5[%c0_52, %c0_53, %c0_54], %64 {strides = array<i32>} : memref<1x40x64xbf16, #tpu.memory_space<vmem>>, vector<1x40x64xbf16>,
    return
  }
  func.func @transform_0(%arg0: i32) -> (i32, i32, i32) {
    %c0_i32 = arith.constant 0 : i32
    %c0_i32_0 = arith.constant 0 : i32
    %c0_i32_1 = arith.constant 0 : i32
    return %arg0, %c0_i32, %c0_i32_0 : i32, i32, i32
  }
  func.func @transform_1(%arg0: i32) -> (i32, i32, i32) {
    %c0_i32 = arith.constant 0 : i32
    %c0_i32_0 = arith.constant 0 : i32
    %c0_i32_1 = arith.constant 0 : i32
    %c0_i32_2 = arith.constant 0 : i32
    return %c0_i32, %c0_i32_0, %c0_i32_1 : i32, i32, i32
  }
  func.func @transform_2(%arg0: i32) -> (i32, i32) {
    %c0_i32 = arith.constant 0 : i32
    %c0_i32_0 = arith.constant 0 : i32
    %c0_i32_1 = arith.constant 0 : i32
    return %c0_i32, %c0_i32_0 : i32, i32
  }
  func.func @transform_3(%arg0: i32) -> (i32, i32) {
    %c0_i32 = arith.constant 0 : i32
    %c0_i32_0 = arith.constant 0 : i32
    %c0_i32_1 = arith.constant 0 : i32
    return %c0_i32, %c0_i32_0 : i32, i32
  }
  func.func @transform_4(%arg0: i32) -> (i32, i32, i32) {
    %c0_i32 = arith.constant 0 : i32
    %c0_i32_0 = arith.constant 0 : i32
    %c0_i32_1 = arith.constant 0 : i32
    return %arg0, %c0_i32, %c0_i32_0 : i32, i32, i32
  }
}

</mosaic_0001>

<bundles_post_ra>
// kernel: tpu_custom_call.1
= control target key start
LH: loop header
LB: loop body
LE: loop exit
PB: predicated region body
PF: predicated region fallthrough
CT: control target
= control target key end

     0   :  { %9 = vsyncpa [#allocation3], 0  ;;  %s1431_s0 = inlined_call_operand.vmem [shape: bf16[2,70,16], index: 0, kind: input, shape index: {}]   ;;  %s1432_s1 = inlined_call_operand.vmem [shape: bf16[9,16,64], index: 1, kind: input, shape index: {}]   ;;  %s1433_s2 = inlined_call_operand.vmem [shape: f32[1,64], index: 2, kind: input, shape index: {}]   ;;  %s1434_s3 = inlined_call_operand.vmem [shape: f32[1,64], index: 3, kind: input, shape index: {}]   ;;  %s1435_s4 = inlined_call_operand.hbm [shape: bf16[2,40,64], index: 4, kind: output, shape index: {}]  }
   0x1   :  { %11 = vsyncpa [#allocation3 + $0x1], 0  ;;  %s1158_s15 = smov 0   ;;  %s1160_s16 = smov 0  }
   0x2   :  { %s1162_s17 = smov 0   ;;  %s1164_s18 = smov 0  }
   0x3 LB: > { %s1179_s19 = sadd.s32 4294967295, %s1129_s18   ;;  %s901_s20 = sadd.s32 4294967294, %s1129_s18   ;;  %s1129_s18 = sphi %s1164_s18, %s1441_s18   ;;  %s1125_s17 = sphi %s1162_s17, %s1440_s17   ;;  %s1121_s16 = sphi %s1160_s16, %s1439_s16   ;;  %s1117_s15 = sphi %s1158_s15, %s1438_s15  }
   0x4   : > { %s1183_s21 = sadd.s32 1, %s1129_s18   ;;  %s113_s22 = sadd.s32 1, %s1125_s17 }
   0x5   : > { %s110_s23 = ssub.s32 %s1129_s18, %s1183_s21  ;;  %p123_p0 = scmp.ne.s32.totalorder %s1125_s17, %s1121_s16 }
   0x6   : > { %p111_p1 = scmp.eq.s32.totalorder %s110_s23, 0  ;;  %p124_p2 = scmp.eq.s32.totalorder %s1179_s19, 1 }
   0x7   : > { %p129_p3 = scmp.ne.s32.totalorder %s1121_s16, %s1117_s15  ;;  %p130_p4 = scmp.eq.s32.totalorder %s901_s20, 1 }
   0x8   : > { %s1194_s24 = scalar_select %p111_p1, %s1125_s17, %s113_s22  }
   0x9   : > { %p1196_p5 = por %p124_p2, %p123_p0  ;;  %p1200_p6 = por %p130_p4, %p129_p3 }
   0xa   : > { %p904_p7 = scmp.ge.s32.totalorder %s1129_s18, 1  ;;  %p165_p8 = scmp.lt.s32.totalorder %s1129_s18, 3 }
   0xc   : > { %p166_p9 = pnand %p904_p7, %p165_p8 }
   0xd   : > { %p191_p10 = scmp.lt.s32.totalorder (!%p166_p9), %s1179_s19, 1  ;;  %s188_s9 = sand.u32 (!%p166_p9), 1, %s1121_s16  }
   0xe   : > { %169 = sbr.rel (%p166_p9) target bundleno = 282 (0x11a), region = 36  ;;  %s824_s28 = scalar_lea.sflag (!%p166_p9), [#allocation3], %s188_s9 }
   0xf   : > { %s1021_s12 = smul.u32 (!%p166_p9), 20, %s188_s9  ;;  %s1087_s7 = scalar_lea.hbm (!%p166_p9), %s1435_s4, 40 }
  0x11   : > { %s1372_s13 = scalar_lea.vmem (!%p166_p9), [#allocation2], %s1021_s12 }
  0x12   : > { %s836_s27 = sshll.u32 (!%p166_p9), %s1372_s13, 4  ;;  %s837_s27 = int_to_ptr.vmem [resolvable:$true] %s836_s27 }
  0x13   : > { %v1002_v0 = vld [vmem:[%s1432_s1 + $0x8] sm:$0xff]  ;;  %v1003_v1 = vld [vmem:[%s1432_s1 + $0x10] sm:$0xff]  ;;  %v1001_v2 = vld [vmem:[%s1432_s1] sm:$0xff]  ;;  %s192_s11 = scalar_select %p191_p10, %s1179_s19, 1  ;;  %vm223_vm0 = vsmask.f32 7424 }
  0x14   : > { %v1005_v3 = vld [vmem:[%s1432_s1 + $0x18] sm:$0xff]  ;;  %v1006_v4 = vld [vmem:[%s1432_s1 + $0x20] sm:$0xff]  ;;  %1019 = vmatpush.bf16.msra.mxu1 %v1002_v0  ;;  %1020 = vmatpush.bf16.msra.mxu2 %v1002_v0  ;;  %vm330_vm1 = vcmask 1046528   ;;  %vm253_vm2 = vcmask 130048   ;;  %v1007_v32 = vld [vmem:[%s1432_s1 + $0x28] sm:$0xff]  ;;  %vm535_vm4 = vcmask 1045504  }
  0x15   : > { %v1010_v5 = vld [vmem:[%s1432_s1 + $0x38] sm:$0xff]  ;;  %270 = vmatpush.bf16.msra.mxu0 %v1002_v0  ;;  %s1022_s14 = smul.u32 36, %s192_s11  ;;  %430 = vmatpush.bf16.msra.mxu3 %v1005_v3  ;;  %v1009_v34 = vld [vmem:[%s1432_s1 + $0x30] sm:$0xff]  ;;  %v1011_v36 = vld [vmem:[%s1432_s1 + $0x40] sm:$0xff]  ;;  %vm458_vm3 = vsmask.f32 6400 }
  0x16   : > { %vm663_vm5 = vsmask.f32 5376  ;;  %vm740_vm6 = vcmask 1044480   ;;  %vm817_vm7 = vcmask 519168  }
  0x17   : > { %s1229_s23 = scalar_lea.vmem %s1431_s0, %s1022_s14  ;;  %s1023_s14 = smul.u32 20, %s1179_s19 }
  0x18   : > { %358 = vmatpush.bf16.msrb.mxu2 %v1003_v1  ;;  %307 = vmatpush.bf16.msrb.mxu1 %v1001_v2  ;;  %v1232_v6 = vld [vmem:[%s1229_s23 + $0x8] sm:$0xff]  ;;  %v1235_v7 = vld [vmem:[%s1229_s23 + $0x10] sm:$0xff]   ;;  %v1242_v11 = vld [vmem:[%s1229_s23] sm:$0xff]  }
  0x19   : > { %507 = vmatpush.bf16.msrb.mxu0 %v1006_v4  ;;  %712 = vmatpush.bf16.msrb.mxu3 %v1010_v5  ;;  %v204_v8 = vld [vmem:[%s1229_s23 + $0x14] sm:$0x1]  ;;  %v1239_v9 = vunpack.c.l.b16 %v1235_v7  ;;  %v379_v12 = vld [vmem:[%s1229_s23 + $0x4] sm:$0xe]  ;;  %v1246_v13 = vld [vmem:[%s1229_s23 + $0x8] sm:$0xff]   ;;  %v232_v14 = vshll.u32 %v1232_v6, 16  ;;  %v398_v44 = vunpack.c.h.b16 %v1235_v7 }
  0x1a   : > { %v219_v10 = vunpack.c.l.b16 %v204_v8  ;;  %v236_v15 = vshrl.u32 %v1232_v6, 16  ;;  %v225_v16 = vshrl.u32 %v1242_v11, 16  ;;  %v227_v17 = vshll.u32 %v1242_v11, 16  ;;  %v1253_v18 = vld [vmem:[%s1229_s23 + $0xc] sm:$0xff]  ;;  %v384_v35 = vld [vmem:[%s1229_s23 + $0x18] sm:$0x1] }
  0x1b   : > { %v394_v20 = vunpack.c.l.b16 %v379_v12  ;;  %v395_v21 = vunpack.c.l.b16 %v1246_v13  ;;  %v234_v22 = vrot.slane %v232_v14, 1  ;;  %v404_v27 = vrot.slane %v1253_v18, 1  ;;  %v1016_v46 = vld [vmem:[%s1229_s23] sm:$0xf0]  ;;  %v1017_v47 = vld [vmem:[%s1229_s23] sm:$0xe] }
  0x1c   : > { %v1256_v19 = vpack.c.b16 %v219_v10, %v1239_v9  ;;  %v229_v23 = vrot.slane %v227_v17, 1  ;;  %v468_v42 = vshrl.u32 %v1253_v18, 16  ;;  %v471_v43 = vshll.u32 %v1253_v18, 16  ;;  %v451_v53 = vld [vmem:[%s1229_s23 + $0x18] sm:$0x3] }
  0x1d   : > { %v400_v26 = vpack.c.b16 %v395_v21, %v394_v20  ;;  %v238_v28 = vor.u32 %v236_v15, %v234_v22  ;;  %v399_v45 = vunpack.c.l.b16 %v384_v35  ;;  %v1018_v54 = vor.u32 %v1017_v47, %v1016_v46  ;;  %v528_v3 = vld [vmem:[%s1229_s23 + $0x4] sm:$0xc] }
  0x1e   : > { %v240_v24 = vshll.u32 %v1256_v19, 16  ;;  %v244_v25 = vshrl.u32 %v1256_v19, 16  ;;  %v230_v29 = vor.u32 %v229_v23, %v225_v16  ;;  %v470_v50 = vrot.slane %v468_v42, 1  ;;  %v1008_v23 = vld [vmem:[%s1229_s23 + $0x10] sm:$0xff] }
  0x1f   : > { %v403_v31 = vrot.slane %v400_v26, 1  ;;  %v460_v40 = vshrl.u32 %v400_v26, 16  ;;  %v463_v41 = vshll.u32 %v400_v26, 16  ;;  %v473_v51 = vrot.slane %v471_v43, 2 }
  0x20   : > { %v242_v30 = vrot.slane %v240_v24, 1  ;;  %v235_v33 = vsel %vm223_vm0, %v230_v29, %v234_v22  ;;  %v402_v52 = vpack.c.b16 %v399_v45, %v398_v44  ;;  %v456_v57 = vunpack.c.l.b16 %v451_v53  ;;  %v589_v53 = vld [vmem:[%s1229_s23 + $0x1c] sm:$0x3] }
  0x21   : > { %916 = vmatmul.msk.bf16.vlgmr.msra.gmra.mxu0 %vm253_vm2, %v235_v33  ;;  %v405_v39 = vsel %vm330_vm1, %v403_v31, %v404_v27  ;;  %v462_v48 = vrot.slane %v460_v40, 1  ;;  %v465_v49 = vrot.slane %v463_v41, 2  ;;  %v474_v56 = vor.u32 %v473_v51, %v470_v50  ;;  %v588_v31 = vld [vmem:[%s1229_s23 + $0x18] sm:$0xf] }
  0x22   : > { %v243_v37 = vsel %vm223_vm0, %v238_v28, %v242_v30  ;;  %v246_v38 = vor.u32 %v244_v25, %v242_v30  ;;  %945 = vmatmul.msk.bf16.vlgmr.msra.gmra.mxu3 %vm253_vm2, %v405_v39  ;;  %768 = vmatpush.bf16.msra.mxu0 %v1011_v36  ;;  %v406_v58 = vrot.slane %v402_v52, 1  ;;  %v331_v59 = vrot.slane %v1018_v54, 1 }
  0x23   : > { %917 = vmatmul.msk.bf16.vlgmr.msra.gmra.mxu1 %vm253_vm2, %v243_v37  ;;  %v466_v55 = vor.u32 %v465_v49, %v462_v48  ;;  %v332_v60 = vrot.slane %v1232_v6, 1  ;;  %v1287_v62 = vpack.c.b16 %v456_v57, %v398_v44  ;;  %v533_v4 = vunpack.c.l.b16 %v528_v3 }
  0x24   : > { %918 = vmatmul.msk.bf16.vlgmr.msra.gmra.mxu2 %vm253_vm2, %v246_v38  ;;  %563 = vmatpush.bf16.msra.mxu1 %v1007_v32  ;;  %v407_v63 = vsel %vm330_vm1, %v404_v27, %v406_v58  ;;  %v537_v10 = vrot.slane %v1253_v18, 2  ;;  %v600_v17 = vunpack.c.h.b16 %v1246_v13  ;;  %v334_v20 = vrot.slane %v1256_v19, 1  ;;  %v656_v32 = vld [vmem:[%s1229_s23 + $0x1c] sm:$0x7]  ;;  %v733_v38 = vld [vmem:[%s1229_s23 + $0x8] sm:$0x8] }
  0x25   : > { %635 = vmatpush.bf16.msra.mxu2 %v1009_v34  ;;  %v475_v61 = vsel %vm458_vm3, %v466_v55, %v474_v56  ;;  %v333_v0 = vsel %vm330_vm1, %v331_v59, %v332_v60  ;;  %v477_v1 = vshrl.u32 %v1287_v62, 16  ;;  %v480_v2 = vshll.u32 %v1287_v62, 16 }
  0x26   : > { %v534_v8 = vpack.c.b16 %v395_v21, %v533_v4  ;;  %v335_v24 = vsel %vm330_vm1, %v332_v60, %v334_v20  ;;  %v673_v19 = vshrl.u32 %v1008_v23, 16  ;;  %v676_v26 = vshll.u32 %v1008_v23, 16 }
  0x27   : > { %v479_v5 = vrot.slane %v477_v1, 1  ;;  %v482_v7 = vrot.slane %v480_v2, 2  ;;  %v603_v35 = vunpack.c.l.b16 %v588_v31  ;;  %v661_v36 = vunpack.c.l.b16 %v656_v32 }
  0x28   : > { %v536_v12 = vrot.slane %v534_v8, 2  ;;  %v675_v29 = vrot.slane %v673_v19, 2  ;;  %v678_v30 = vrot.slane %v676_v26, 3  ;;  %v738_v40 = vunpack.c.l.b16 %v733_v38 }
  0x29   : > { %v483_v14 = vor.u32 %v482_v7, %v479_v5  ;;  %v662_v39 = vpack.c.b16 %v661_v36, %v603_v35  ;;  %v742_v46 = vrot.slane %v1008_v23, 3  ;;  %v609_v49 = vrot.slane %v1008_v23, 2 }
  0x2a   : > { %v538_v15 = vsel %vm535_vm4, %v536_v12, %v537_v10  ;;  %v679_v34 = vor.u32 %v678_v30, %v675_v29  ;;  %v739_v43 = vpack.c.b16 %v600_v17, %v738_v40  ;;  %v604_v54 = vunpack.c.l.b16 %v589_v53 }
  0x2b   : > { %v484_v22 = vsel %vm458_vm3, %v474_v56, %v483_v14  ;;  %v682_v41 = vshrl.u32 %v662_v39, 16  ;;  %v685_v42 = vshll.u32 %v662_v39, 16  ;;  %v744_v56 = vrot.slane %v662_v39, 3 }
  0x2c   : > { %v607_v55 = vpack.c.b16 %v604_v54, %v603_v35  ;;  %v539_v57 = vrot.slane %v1287_v62, 2 }
  0x2d   : > { %v684_v44 = vrot.slane %v682_v41, 2  ;;  %v687_v45 = vrot.slane %v685_v42, 3  ;;  %v745_v59 = vsel %vm740_vm6, %v742_v46, %v744_v56 }
  0x2e   : > { %v540_v60 = vsel %vm535_vm4, %v537_v10, %v539_v57 }
  0x2f   : > { %v688_v47 = vor.u32 %v687_v45, %v684_v44 }
  0x31   : > { %954 = vmatmul.msk.bf16.vlgmr.msrb.gmra.mxu0 %vm253_vm2, %v475_v61  ;;  %v689_v51 = vsel %vm663_vm5, %v679_v34, %v688_v47 }
  0x32   : > { %946 = vmatmul.msk.bf16.gmra.mxu3 %vm253_vm2, %v407_v63 }
  0x33   : > { %923 = vmatmul.msk.bf16.vlgmr.msrb.gmra.mxu1 %vm253_vm2, %v1242_v11  ;;  %v584_v11 = vld [vmem:[%s1229_s23 + $0x8] sm:$0xc]  ;;  %s835_s23 = scalar_lea.hbm %s1435_s4, %s1023_s14 }
  0x34   : > { %932 = vmatmul.msk.bf16.vlgmr.msrb.gmra.mxu2 %vm253_vm2, %v333_v0  ;;  %v599_v16 = vunpack.c.l.b16 %v584_v11  ;;  %s838_s19 = sshll.u32 %s835_s23, 4  ;;  %s839_s19 = int_to_ptr.hbm [resolvable:$true] %s838_s19 }
  0x35   : > { %s1081_s29 = sshra.s32 %s839_s19, 4  ;;  %s1082_s29 = int_to_ptr.hbm [resolvable:$true] %s1081_s29 }
  0x36   : > { %v605_v21 = vpack.c.b16 %v600_v17, %v599_v16  ;;  %s1083_s30 = scalar_lea.hbm %s1082_s29, 20  ;;  %p1088_p0 = scmp.lt.s32.totalorder %s1082_s29, %s1435_s4 }
  0x37   : > { %p1084_p11 = scmp.ne.s32.totalorder %s1082_s29, %s1083_s30  ;;  %p1089_p1 = scmp.lt.s32.totalorder %s1087_s7, %s1083_s30 }
  0x38   : > { %v665_v13 = vshrl.u32 %v605_v21, 16  ;;  %v668_v25 = vshll.u32 %v605_v21, 16  ;;  %v608_v48 = vrot.slane %v605_v21, 2 }
  0x39   : > { %p1085_p12 = pnand %p1084_p11, %p1196_p5  ;;  %p1090_p2 = por %p1089_p1, %p1088_p0 }
  0x3a   : > { %v667_v27 = vrot.slane %v665_v13, 2  ;;  %v670_v28 = vrot.slane %v668_v25, 3  ;;  %v610_v52 = vsel %vm535_vm4, %v608_v48, %v609_v49 }
  0x3b   : > { %p1086_p13 = pneg %p1085_p12 }
  0x3c   : > { %v671_v33 = vor.u32 %v670_v28, %v667_v27 }
  0x3d   : > { %p1091_p3 = pnand %p1090_p2, %p1086_p13 }
  0x3e   : > { %v680_v37 = vsel %vm663_vm5, %v671_v33, %v679_v34 }
  0x41   : > { %955 = vmatmul.msk.bf16.gmra.mxu0 %vm253_vm2, %v484_v22 }
  0x42   : > { %947 = vmatmul.msk.bf16.gmra.mxu3 %vm253_vm2, %v406_v58  ;;  %v611_v58 = vrot.slane %v607_v55, 2 }
  0x43   : > { %924 = vmatmul.msk.bf16.gmra.mxu1 %vm253_vm2, %v1232_v6  ;;  %v286_v6 = vpack.c.b16 %v1239_v9, %v1239_v9  ;;  %v741_v9 = vrot.slane %v739_v43, 3 }
  0x44   : > { %933 = vmatmul.msk.bf16.gmra.mxu2 %vm253_vm2, %v335_v24  ;;  %v612_v61 = vsel %vm535_vm4, %v609_v49, %v611_v58 }
  0x45   : > { %v743_v50 = vsel %vm740_vm6, %v741_v9, %v742_v46 }
  0x51   : > { %956 = vmatmul.msk.bf16.gmra.mxu0 %vm253_vm2, %v483_v14 }
  0x52   : > { %985 = vmatmul.msk.bf16.vlgmr.msrb.gmra.mxu3 %vm253_vm2, %v680_v37 }
  0x53   : > { %925 = vmatmul.msk.bf16.gmra.mxu1 %vm253_vm2, %v286_v6 }
  0x54   : > { %934 = vmatmul.msk.bf16.gmra.mxu2 %vm253_vm2, %v334_v20 }
  0x61   : > { %994 = vmatmul.msk.bf16.vlgmr.msra.gmra.mxu0 %vm253_vm2, %v743_v50  ;;  %v1366_v50 = vld [vmem:[%s1434_s3] ss:$0 sm:$0xff] }
  0x62   : > { %986 = vmatmul.msk.bf16.gmra.mxu3 %vm253_vm2, %v689_v51 }
  0x63   : > { %963 = vmatmul.msk.bf16.vlgmr.msra.gmra.mxu1 %vm253_vm2, %v538_v15 }
  0x64   : > { %976 = vmatmul.msk.bf16.vlgmr.msra.gmra.mxu2 %vm253_vm2, %v610_v52 }
  0x71   : > { %995 = vmatmul.msk.bf16.gmra.mxu0 %vm253_vm2, %v745_v59 }
  0x72   : > { %987 = vmatmul.msk.bf16.gmra.mxu3 %vm253_vm2, %v688_v47  ;;  %v1360_v47 = vld [vmem:[%s1433_s2] ss:$0 sm:$0xff] }
  0x73   : > { %964 = vmatmul.msk.bf16.gmra.mxu1 %vm253_vm2, %v540_v60 }
  0x74   : > { %977 = vmatmul.msk.bf16.gmra.mxu2 %vm253_vm2, %v612_v61 }
  0x81   : > { %996 = vmatmul.msk.bf16.gmra.mxu0 %vm253_vm2, %v744_v56 }
  0x83   : > { %965 = vmatmul.msk.bf16.gmra.mxu1 %vm253_vm2, %v539_v57 }
  0x84   : > { %978 = vmatmul.msk.bf16.gmra.mxu2 %vm253_vm2, %v611_v58 }
  0x9e   : > { %v272_v62 = vpop.f32.mrf.mxu0 }
  0xa0   : > { %v277_v18 = vpop.f32.mrf.mxu1 }
  0xa5   : > { %v432_v63 = vpop.f32.mrf.mxu3 }
  0xa6   : > { %v274_v1 = vpop.f32.mrf.mxu0 }
  0xa7   : > { %v1347_v0 = vpop.f32.mrf.mxu2 }
  0xa8   : > { %v279_v2 = vpop.f32.mrf.mxu1 }
  0xad   : > { %v434_v3 = vpop.f32.mrf.mxu3 }
  0xae   : > { %v509_v5 = vpop.f32.mrf.mxu0 }
  0xaf   : > { %v284_v4 = vpop.f32.mrf.mxu2 }
  0xb0   : > { %v309_v7 = vpop.f32.mrf.mxu1 }
  0xb1   : > { %v310_v30 = vadd.f32 %v309_v7, %v272_v62 }
  0xb5   : > { %v437_v8 = vpop.f32.mrf.mxu3 }
  0xb6   : > { %v511_v11 = vpop.f32.mrf.mxu0 }
  0xb7   : > { %v360_v10 = vpop.f32.mrf.mxu2 }
  0xb8   : > { %v311_v12 = vpop.f32.mrf.mxu1  ;;  %v374_v31 = vadd.f32 %v360_v10, %v310_v30 }
  0xb9   : > { %v312_v6 = vadd.f32 %v311_v12, %v274_v1 }
  0xba   : > { %v446_v35 = vadd.f32 %v432_v63, %v374_v31 }
  0xbc   : > { %v523_v38 = vadd.f32 %v509_v5, %v446_v35 }
  0xbd   : > { %v1349_v14 = vpop.f32.mrf.mxu3 }
  0xbe   : > { %v514_v16 = vpop.f32.mrf.mxu0 }
  0xbf   : > { %v362_v15 = vpop.f32.mrf.mxu2 }
  0xc0   : > { %v314_v17 = vpop.f32.mrf.mxu1  ;;  %v375_v37 = vadd.f32 %v362_v15, %v312_v6 }
  0xc1   : > { %v315_v9 = vadd.f32 %v314_v17, %v277_v18 }
  0xc2   : > { %v447_v43 = vadd.f32 %v434_v3, %v375_v37 }
  0xc4   : > { %v524_v51 = vadd.f32 %v511_v11, %v447_v43 }
  0xc5   : > { %v1351_v20 = vpop.f32.mrf.mxu3 }
  0xc6   : > { %v1353_v23 = vpop.f32.mrf.mxu0 }
  0xc7   : > { %v365_v22 = vpop.f32.mrf.mxu2 }
  0xc8   : > { %v316_v21 = vpop.f32.mrf.mxu1  ;;  %v376_v48 = vadd.f32 %v365_v22, %v315_v9 }
  0xc9   : > { %v317_v61 = vadd.f32 %v316_v21, %v279_v2 }
  0xca   : > { %v448_v57 = vadd.f32 %v437_v8, %v376_v48 }
  0xcc   : > { %v525_v4 = vadd.f32 %v514_v16, %v448_v57 }
  0xcd   : > { %v444_v24 = vpop.f32.mrf.mxu3 }
  0xce   : > { %v1355_v25 = vpop.f32.mrf.mxu0 }
  0xcf   : > { %v367_v13 = vpop.f32.mrf.mxu2 }
  0xd0   : > { %v319_v19 = vpop.f32.mrf.mxu1  ;;  %v377_v63 = vadd.f32 %v367_v13, %v317_v61 }
  0xd1   : > { %v320_v16 = vadd.f32 %v319_v19, %v1347_v0 }
  0xd2   : > { %v449_v2 = vadd.f32 %v1349_v14, %v377_v63 }
  0xd5   : > { %v714_v26 = vpop.f32.mrf.mxu3 }
  0xd6   : > { %v521_v28 = vpop.f32.mrf.mxu0 }
  0xd7   : > { %v370_v27 = vpop.f32.mrf.mxu2  ;;  %v526_v28 = vadd.f32 %v1353_v23, %v449_v2 }
  0xd8   : > { %v321_v29 = vpop.f32.mrf.mxu1  ;;  %v378_v24 = vadd.f32 %v370_v27, %v320_v16 }
  0xdd   : > { %v716_v32 = vpop.f32.mrf.mxu3 }
  0xde   : > { %v770_v34 = vpop.f32.mrf.mxu0 }
  0xdf   : > { %v372_v33 = vpop.f32.mrf.mxu2 }
  0xe0   : > { %v565_v36 = vpop.f32.mrf.mxu1  ;;  %v450_v33 = vadd.f32 %v1351_v20, %v378_v24 }
  0xe1   : > { %v579_v39 = vadd.f32 %v565_v36, %v523_v38 }
  0xe2   : > { %v527_v6 = vadd.f32 %v1355_v25, %v450_v33 }
  0xe5   : > { %v719_v40 = vpop.f32.mrf.mxu3 }
  0xe6   : > { %v772_v42 = vpop.f32.mrf.mxu0 }
  0xe7   : > { %v637_v41 = vpop.f32.mrf.mxu2 }
  0xe8   : > { %v651_v44 = vadd.f32 %v637_v41, %v579_v39  ;;  %v567_v45 = vpop.f32.mrf.mxu1 }
  0xe9   : > { %v580_v53 = vadd.f32 %v567_v45, %v524_v51 }
  0xea   : > { %v728_v46 = vadd.f32 %v714_v26, %v651_v44 }
  0xec   : > { %v784_v49 = vadd.f32 %v770_v34, %v728_v46 }
  0xed   : > { %v721_v54 = vpop.f32.mrf.mxu3 }
  0xee   : > { %v793_v52 = vmul.f32 %v1360_v47, %v784_v49  ;;  %v775_v56 = vpop.f32.mrf.mxu0 }
  0xef   : > { %v639_v55 = vpop.f32.mrf.mxu2 }
  0xf0   : > { %v802_v58 = vadd.f32 %v1366_v50, %v793_v52  ;;  %v652_v59 = vadd.f32 %v639_v55, %v580_v53  ;;  %v570_v60 = vpop.f32.mrf.mxu1 }
  0xf1   : > { %v581_v7 = vadd.f32 %v570_v60, %v525_v4 }
  0xf2   : > { %v807_v62 = vmax.f32 %v802_v58, 0.0  ;;  %v729_v18 = vadd.f32 %v716_v32, %v652_v59 }
  0xf4   : > { %v812_v1 = vpack.c.bf16 %v807_v62, %v807_v62  ;;  %v785_v3 = vadd.f32 %v772_v42, %v729_v18 }
  0xf5   : > { %v724_v8 = vpop.f32.mrf.mxu3 }
  0xf6   : > { %818 = vst.msk [vmem:[%s1372_s13] sm:$0xf] %vm817_vm7, %v812_v1  ;;  %v794_v5 = vmul.f32 %v1360_v47, %v785_v3  ;;  %v777_v11 = vpop.f32.mrf.mxu0 }
  0xf7   : > { %v642_v10 = vpop.f32.mrf.mxu2 }
  0xf8   : > { %v803_v12 = vadd.f32 %v1366_v50, %v794_v5  ;;  %v653_v15 = vadd.f32 %v642_v10, %v581_v7  ;;  %v572_v17 = vpop.f32.mrf.mxu1 }
  0xf9   : > { %v582_v30 = vadd.f32 %v572_v17, %v526_v28 }
  0xfa   : > { %v808_v22 = vmax.f32 %v803_v12, 0.0  ;;  %v730_v21 = vadd.f32 %v719_v40, %v653_v15 }
  0xfc   : > { %v813_v13 = vpack.c.bf16 %v808_v22, %v808_v22  ;;  %v786_v26 = vadd.f32 %v775_v56, %v730_v21 }
  0xfd   : > { %v726_v14 = vpop.f32.mrf.mxu3 }
  0xfe   : > { %819 = vst.msk [vmem:[%s1372_s13 + $0x4] sm:$0xf] %vm817_vm7, %v813_v13  ;;  %v795_v29 = vmul.f32 %v1360_v47, %v786_v26  ;;  %v780_v32 = vpop.f32.mrf.mxu0 }
  0xff   : > { %v644_v31 = vpop.f32.mrf.mxu2 }
 0x100   : > { %v804_v0 = vadd.f32 %v1366_v50, %v795_v29  ;;  %v654_v19 = vadd.f32 %v644_v31, %v582_v30  ;;  %v575_v27 = vpop.f32.mrf.mxu1 }
 0x101   : > { %v583_v38 = vadd.f32 %v575_v27, %v527_v6 }
 0x102   : > { %v809_v34 = vmax.f32 %v804_v0, 0.0  ;;  %v731_v35 = vadd.f32 %v721_v54, %v654_v19 }
 0x104   : > { %v814_v36 = vpack.c.bf16 %v809_v34, %v809_v34  ;;  %v787_v23 = vadd.f32 %v777_v11, %v731_v35 }
 0x106   : > { %820 = vst.msk [vmem:[%s1372_s13 + $0x8] sm:$0xf] %vm817_vm7, %v814_v36  ;;  %v796_v37 = vmul.f32 %v1360_v47, %v787_v23  ;;  %v782_v20 = vpop.f32.mrf.mxu0 }
 0x107   : > { %v647_v39 = vpop.f32.mrf.mxu2 }
 0x108   : > { %v805_v40 = vadd.f32 %v1366_v50, %v796_v37  ;;  %v655_v41 = vadd.f32 %v647_v39, %v583_v38  ;;  %v577_v42 = vpop.f32.mrf.mxu1 }
 0x10a   : > { %v810_v43 = vmax.f32 %v805_v40, 0.0  ;;  %v732_v44 = vadd.f32 %v724_v8, %v655_v41 }
 0x10c   : > { %v815_v45 = vpack.c.bf16 %v810_v43, %v810_v43  ;;  %v788_v9 = vadd.f32 %v780_v32, %v732_v44 }
 0x10e   : > { %821 = vst.msk [vmem:[%s1372_s13 + $0xc] sm:$0xf] %vm817_vm7, %v815_v45  ;;  %v797_v25 = vmul.f32 %v1360_v47, %v788_v9 }
 0x10f   : > { %v649_v46 = vpop.f32.mrf.mxu2 }
 0x110   : > { %v806_v48 = vadd.f32 %v1366_v50, %v797_v25 }
 0x112   : > { %v811_v49 = vmax.f32 %v806_v48, 0.0 }
 0x114   : > { %v816_v51 = vpack.c.bf16 %v811_v49, %v811_v49 }
 0x116   : > { %822 = vst.msk [vmem:[%s1372_s13 + $0x10] sm:$0xf] %vm817_vm7, %v816_v51 }
 0x117   : > { %1094 = shalt.err (!%p1091_p3)
}
 0x118   : > { %s1131_s9 = smov 64   ;;  %s1132_s11 = smov 4  }
 0x119   : > { %1024 = dma.vmem_to_hbm [thread:$0]  (%p1196_p5), %s837_s27, 320, %s839_s19, %s824_s28, %s1131_s9, %s1131_s9, %s1132_s11  }
 0x11a PF: > { %p1030_p4 = scmp.ge.s32.totalorder %s1129_s18, 2  ;;  %s853_s12 = sand.u32 1, %s1117_s15  }
 0x11b   : > { %s854_s13 = scalar_lea.sflag [#allocation3], %s853_s12 }
 0x11c   : > { %p1027_p7 = pnand %p1030_p4, %p1200_p6 }
 0x11e   : > { %p1028_p8 = pneg %p1027_p7 }
 0x120   : > { %1112 = dma.done.wait (%p1028_p8), %s854_s13, 320  }
 0x121   : > { %1114 = vsyncadd (%p1028_p8), %s854_s13, 4294966976  ;;  %p14_p9 = scmp.ge.s32.totalorder %s1183_s21, 4   ;;  %s1438_s15 = smov %s1121_s16 }
 0x122   : > { %s1439_s16 = smov %s1125_s17  ;;  %s1440_s17 = smov %s1194_s24 }
 0x123   : > { %s1441_s18 = smov %s1183_s21  ;;  %16 = sbr.rel (!%p14_p9) target bundleno = 3 (0x3), region = 79 }
 0x128   :  { %860 = vsyncpa [#allocation3], 1 }
 0x129   :  { %862 = vsyncpa [#allocation3 + $0x1], 1 }

</bundles_post_ra>
